<compile_context>
chip_gen: v7x
topology: tpu7x:2x2x1
jax: 0.10.0
libtpu: 0.0.40
codegen_flags: <defaults>
</compile_context>

<pallas_src>
import functools
import math

import jax
import jax.numpy as jnp
from jax import lax
from jax.experimental import pallas as pl
from jax.experimental.pallas import tpu as pltpu


def attention_headv3_kernel(x_ref,
                            wqkv_ref, bqkv_ref,
                            wr_ref, br_ref,
                            wl_ref, bl_ref,
                            pred_ref, feats_ref,
                            qkv_scr, att_scr,
                            *, key_channels, value_channels, block_batch, hw):
    kc, vc, bb = key_channels, value_channels, block_batch
    f32, bf16 = jnp.float32, jnp.bfloat16

    x = x_ref[0]                                   # (C, L) f32, L = bb*hw
    x_bf = x.astype(bf16)

    # Fused keys/queries/values 1x1 convs: one (2Kc+Vc, C) x (C, L) MXU pass,
    # single bias add + ReLU.  Weight ref is read right at the dot.
    qkv = jnp.dot(wqkv_ref[...], x_bf, preferred_element_type=f32)      # (2Kc+Vc, L)
    qkv = jnp.maximum(qkv + bqkv_ref[...], 0.0)
    # Stage through VMEM scratch: the per-sample loop below slices a *ref*
    # (robust lane-offset loads) instead of lane-slicing a live value.
    qkv_scr[...] = qkv

    # Per-sample attention: the spatial softmax and the two contractions must
    # not mix samples sharing the packed lane axis.  bb is small (<= ~4) and
    # every intermediate here is tiny (<= Vc x hw) and staged via scratch, so a
    # static unroll keeps vreg live ranges bounded.
    # TODO(synk): head_count > 1 would need per-head sublane slicing here; the
    # module default (head_count=1) is what is implemented.
    for b in range(bb):
        lo, hi = b * hw, (b + 1) * hw

        k_log = qkv_scr[0:kc, lo:hi]                                    # (Kc, hw)
        q_log = qkv_scr[kc:2 * kc, lo:hi]                               # (Kc, hw)
        v_b = qkv_scr[2 * kc:2 * kc + vc, lo:hi].astype(bf16)           # (Vc, hw)

        # torch: softmax(keys, dim=2) -> over spatial, per sample (exact).
        km = jnp.max(k_log, axis=1, keepdims=True)
        ke = jnp.exp(k_log - km)
        key_b = (ke * (1.0 / jnp.sum(ke, axis=1, keepdims=True))).astype(bf16)

        # torch: softmax(queries, dim=1) -> over channels (per-lane, so the
        # per-sample slice is identical to slicing a full-width softmax).
        qm = jnp.max(q_log, axis=0, keepdims=True)
        qe = jnp.exp(q_log - qm)
        query_b = (qe * (1.0 / jnp.sum(qe, axis=0, keepdims=True))).astype(bf16)

        # context^T = values @ key^T : contract spatial, no explicit .T.
        ctx_t = lax.dot_general(v_b, key_b, (((1,), (1,)), ((), ())),
                                preferred_element_type=f32)             # (Vc, Kc)
        # attended = context^T @ query.
        att_b = jnp.dot(ctx_t.astype(bf16), query_b,
                        preferred_element_type=f32)                     # (Vc, hw)
        att_scr[:, lo:hi] = att_b

    attended = att_scr[...]                                             # (Vc, L)

    # Reprojection 1x1 conv + ReLU (full-lane MXU pass); residual kept in f32.
    reproj = jnp.dot(wr_ref[...], attended.astype(bf16),
                     preferred_element_type=f32)                        # (C, L)
    reproj = jnp.maximum(reproj + br_ref[...], 0.0)
    attention = reproj + x                                              # (C, L) f32

    # conv_logits (class_agnostic -> 1 channel): lane-dense (1, L) row.
    pred = jnp.dot(wl_ref[...], attention.astype(bf16),
                   preferred_element_type=f32) + bl_ref[0, 0]           # (1, L)

    pred_ref[0] = pred
    feats_ref[0] = (attention * x).astype(feats_ref.dtype)              # attention * feats


def _tpu_generation():
    try:
        kind = jax.devices()[0].device_kind.lower()
    except Exception:
        return "unknown"
    if "v5 lite" in kind or "v5e" in kind or "v5lite" in kind:
        return "v5e"
    if "v6" in kind:
        return "v6e"
    if "v7" in kind:
        return "v7x"
    return "unknown"


def _pick_block_batch(n, hw, c, gen):
    """Samples lane-packed per grid step (generation aware).

    * lane-dense: bb*hw should be a multiple of 128 so vregs are fully occupied
      and output stores are unmasked full-lane vst.
    * MXU fill: bb*hw >= 128 on v5e (128-wide MXU) / 256 on v6e & v7x.
    * VMEM: keep double-buffered x/feats blocks + scratch well within the
      per-generation budget (v7x has only 64 MiB per TensorCore).
    * v7x has 2 TensorCores: keep >= 2 grid steps when the batch allows; on
      single-TC chips extra steps are pure overhead, so maximize bb instead.
    """
    target_lanes = 128 if gen == "v5e" else 256
    vmem_budget = (16 if gen == "v7x" else 48) << 20
    per_sample = 24 * c * hw * 4          # rough f32 VMEM footprint per packed sample
    max_bb = int(max(1, min(64, vmem_budget // max(per_sample, 1))))

    quantum = 128 // math.gcd(hw, 128)    # samples per exact 128-lane multiple
    if quantum <= max_bb:
        bb = quantum
        while bb * hw < target_lanes and bb + quantum <= max_bb:
            bb += quantum
    else:
        # hw can't be made an exact lane multiple cheaply; at least reach width.
        bb = min(max_bb, max(1, -(-target_lanes // hw)))

    # Don't pad (much) beyond the real batch: cap at n rounded up to the quantum.
    if quantum <= max_bb:
        n_cap = max(quantum, -(-n // quantum) * quantum)
    else:
        n_cap = max(1, n)
    bb = max(1, min(bb, n_cap))

    if gen == "v7x":
        while bb > quantum and -(-n // bb) < 2:
            bb = max(quantum, bb - quantum)
    return bb


def attention_headv3_forward(x_nchw, params, block_batch=None,
                             feats_dtype=jnp.float32):
    """x_nchw: (N, C, H, W) float32. Returns (attention_pred, attention_feats) in NCHW.

    feats_dtype can be set to bfloat16 to halve feats write-back bytes if the
    consumer tolerates it (v5e HBM-bound case); default keeps f32.
    """
    n, c, h, w = x_nchw.shape
    hw = h * w
    kc = params["wk"].shape[0]      # key_channels   (weights stored (out, in))
    vc = params["wv"].shape[0]      # value_channels
    assert kc % 8 == 0 and vc % 8 == 0, (
        "key/value channels must be multiples of 8 (f32 sublane tile) so the "
        "fused QKV slices stay sublane-aligned")

    gen = _tpu_generation()
    bb = _pick_block_batch(n, hw, c, gen) if block_batch is None else int(block_batch)
    g = -(-n // bb)                 # grid steps
    n_pad = g * bb
    L = bb * hw

    # NCHW -> (N, C, HW); zero-pad ragged batches (sliced off at the end).
    x = x_nchw.reshape(n, c, hw)
    if n_pad != n:
        x = jnp.concatenate([x, jnp.zeros((n_pad - n, c, hw), x.dtype)], axis=0)

    # Lane-pack bb samples per grid step: (G, C, bb*HW).  bb == 1 is a pure
    # reshape; otherwise the wrapper-side transpose buys full lane occupancy
    # and unmasked stores inside the kernel.
    if bb > 1:
        xp = x.reshape(g, bb, c, hw).transpose(0, 2, 1, 3).reshape(g, c, L)
    else:
        xp = x.reshape(g, c, L)

    # Fuse the three projection convs into one weight/bias; matmul weights in
    # bf16 (MXU-native), biases stay f32.
    bf16 = jnp.bfloat16
    w_qkv = jnp.concatenate([params["wk"], params["wq"], params["wv"]],
                            axis=0).astype(bf16)                    # (2Kc+Vc, C)
    b_qkv = jnp.concatenate([params["bk"], params["bq"], params["bv"]],
                            axis=0).reshape(-1, 1).astype(jnp.float32)
    w_r = params["wr"].astype(bf16)                                 # (C, Vc)
    b_r = params["br"].reshape(-1, 1).astype(jnp.float32)           # (C, 1)
    w_l = params["wl"].astype(bf16)                                 # (1, C)
    b_l = params["bl"].reshape(1, 1).astype(jnp.float32)            # (1, 1) -> SMEM

    qc = 2 * kc + vc
    kernel = functools.partial(attention_headv3_kernel,
                               key_channels=kc, value_channels=vc,
                               block_batch=bb, hw=hw)

    full = lambda shp: pl.BlockSpec(shp, lambda i, _n=len(shp): (0,) * _n)

    # Rough per-step VMEM need: x + feats (double-buffered), scratches, weights.
    blk = c * L * 4
    est = 8 * blk + (qc + vc) * L * 4 + (qc * c + c * vc + c) * 2
    cap = {"v5e": 96 << 20, "v6e": 96 << 20, "v7x": 40 << 20}.get(gen, 64 << 20)
    vmem_limit = int(min(cap, max(32 << 20, 2 * est)))
    # TODO(synk): for very large ROIs where a single (C, HW) f32 block exceeds
    # the budget, an online-softmax HW tiling would be needed; not implemented.

    pred_p, feats_p = pl.pallas_call(
        kernel,
        out_shape=(jax.ShapeDtypeStruct((g, 1, L), jnp.float32),
                   jax.ShapeDtypeStruct((g, c, L), feats_dtype)),
        grid_spec=pltpu.PrefetchScalarGridSpec(
            num_scalar_prefetch=0,
            grid=(g,),
            in_specs=[
                pl.BlockSpec((1, c, L), lambda i: (i, 0, 0)),       # packed x
                full((qc, c)), full((qc, 1)),                        # fused q/k/v conv
                full((c, vc)), full((c, 1)),                         # reprojection conv
                full((1, c)),                                        # conv_logits weight
                pl.BlockSpec(memory_space=pltpu.MemorySpace.SMEM),   # conv_logits bias
            ],
            out_specs=[
                pl.BlockSpec((1, 1, L), lambda i: (i, 0, 0)),        # pred (lane-dense)
                pl.BlockSpec((1, c, L), lambda i: (i, 0, 0)),        # feats (lane-dense)
            ],
            scratch_shapes=[
                pltpu.VMEM((qc, L), jnp.float32),    # fused qkv activations
                pltpu.VMEM((vc, L), jnp.float32),    # attended values
            ]),
        compiler_params=pltpu.CompilerParams(
            dimension_semantics=("parallel",),
            vmem_limit_bytes=vmem_limit),
    )(xp, w_qkv, b_qkv, w_r, b_r, w_l, b_l)

    # Undo the lane packing.  pred packing is sample-major -> pure reshape.
    pred = pred_p.reshape(n_pad, 1, hw)[:n].reshape(n, 1, h, w)
    if bb > 1:
        feats = feats_p.reshape(g, c, bb, hw).transpose(0, 2, 1, 3).reshape(n_pad, c, hw)
    else:
        feats = feats_p.reshape(n_pad, c, hw)
    feats = feats[:n].reshape(n, c, h, w)
    return pred, feats


def ref_forward(x_nchw, p):
    """Pure-JAX reference mirroring the PyTorch forward (NCHW, torch axis
    order). Matmul operands are rounded to bf16 with f32 accumulation to mirror
    the kernel's MXU precision."""
    n, c, h, w = x_nchw.shape
    hw = h * w
    bf16, f32 = jnp.bfloat16, jnp.float32

    def conv1x1(x, w_oi, b):  # w_oi: (out, in) — torch 1x1-conv weight layout
        y = jnp.einsum('oc,nchw->nohw', w_oi.astype(bf16), x.astype(bf16),
                       preferred_element_type=f32)
        return y + b[None, :, None, None]

    relu = jax.nn.relu
    keys = relu(conv1x1(x_nchw, p["wk"], p["bk"])).reshape(n, -1, hw)
    queries = relu(conv1x1(x_nchw, p["wq"], p["bq"])).reshape(n, -1, hw)
    values = relu(conv1x1(x_nchw, p["wv"], p["bv"])).reshape(n, -1, hw)

    key = jax.nn.softmax(keys, axis=2)
    query = jax.nn.softmax(queries, axis=1)
    context = jnp.einsum('nks,nvs->nkv', key.astype(bf16), values.astype(bf16),
                         preferred_element_type=f32)
    attended = jnp.einsum('nkv,nks->nvs', context.astype(bf16), query.astype(bf16),
                          preferred_element_type=f32).reshape(n, -1, h, w)

    reproj = relu(conv1x1(attended, p["wr"], p["br"]))
    attention = reproj + x_nchw
    pred = conv1x1(attention, p["wl"], p["bl"])
    feats = attention * x_nchw
    return pred, feats


def make_params(key, in_channels):
    key_channels = in_channels // 2
    value_channels = in_channels
    ks = jax.random.split(key, 10)
    s = 0.05
    mk = lambda k, shp: s * jax.random.normal(k, shp, dtype=jnp.float32)
    # Weights stored as (out, in), i.e. the native torch 1x1-conv layout.
    return {
        "wk": mk(ks[0], (key_channels, in_channels)),
        "bk": mk(ks[1], (key_channels,)),
        "wq": mk(ks[2], (key_channels, in_channels)),
        "bq": mk(ks[3], (key_channels,)),
        "wv": mk(ks[4], (value_channels, in_channels)),
        "bv": mk(ks[5], (value_channels,)),
        "wr": mk(ks[6], (in_channels, value_channels)),
        "br": mk(ks[7], (in_channels,)),
        "wl": mk(ks[8], (1, in_channels)),          # class_agnostic -> 1 channel
        "bl": mk(ks[9], (1,)),
    }


if __name__ == "__main__":
    # Small, module-consistent shapes: N=2, C=64 (key_channels=32), 8x8 ROI feature.
    N, C, H, W = 2, 64, 8, 8
    root = jax.random.PRNGKey(0)
    kx, kp = jax.random.split(root)
    x = jax.random.normal(kx, (N, C, H, W), dtype=jnp.float32)
    params = make_params(kp, C)

    pred, feats = attention_headv3_forward(x, params)
    pred = jax.block_until_ready(pred)
    feats = jax.block_until_ready(feats)

    pred_ref, feats_ref = ref_forward(x, params)
    assert pred.shape == (N, 1, H, W) and feats.shape == (N, C, H, W)
    # Tolerance accounts for bf16 matmul operands (f32 accumulation).
    assert jnp.allclose(pred, pred_ref, atol=2e-2, rtol=2e-2), \
        float(jnp.max(jnp.abs(pred - pred_ref)))
    assert jnp.allclose(feats, feats_ref, atol=2e-2, rtol=2e-2), \
        float(jnp.max(jnp.abs(feats - feats_ref)))

    print("KERNEL_OK")
</pallas_src>

<mosaic_0001>
module attributes {stable_mosaic.version = 11 : i64} {
  func.func @attention_headv3_kernel(%arg0: i32, %arg1: memref<1x64x128xf32, #tpu.memory_space<vmem>>, %arg2: memref<128x64xbf16, #tpu.memory_space<vmem>>, %arg3: memref<128x1xf32, #tpu.memory_space<vmem>>, %arg4: memref<64x64xbf16, #tpu.memory_space<vmem>>, %arg5: memref<64x1xf32, #tpu.memory_space<vmem>>, %arg6: memref<1x64xbf16, #tpu.memory_space<vmem>>, %arg7: memref<1x1xf32, #tpu.memory_space<smem>>, %arg8: memref<1x1x128xf32, #tpu.memory_space<vmem>>, %arg9: memref<1x64x128xf32, #tpu.memory_space<vmem>>, %arg10: memref<128x128xf32, #tpu.memory_space<vmem>>, %arg11: memref<64x128xf32, #tpu.memory_space<vmem>>) attributes {dimension_semantics = [#tpu.dimension_semantics<parallel>], iteration_bounds = array<i64: 1>, scalar_prefetch = 0 : i64, scratch_operands = 2 : i64, tpu.core_type = #tpu.core_type<tc>, window_params = [{transform_indices = @transform_0, window_bounds = array<i64: 1, 64, 128>}, {pipeline_mode = #tpu.pipeline_mode<synchronous>, transform_indices = @transform_1, window_bounds = array<i64: 128, 64>}, {pipeline_mode = #tpu.pipeline_mode<synchronous>, transform_indices = @transform_2, window_bounds = array<i64: 128, 1>}, {pipeline_mode = #tpu.pipeline_mode<synchronous>, transform_indices = @transform_3, window_bounds = array<i64: 64, 64>}, {pipeline_mode = #tpu.pipeline_mode<synchronous>, transform_indices = @transform_4, window_bounds = array<i64: 64, 1>}, {pipeline_mode = #tpu.pipeline_mode<synchronous>, transform_indices = @transform_5, window_bounds = array<i64: 1, 64>}, {transform_indices = @transform_6, window_bounds = array<i64: 1, 1>}, {transform_indices = @transform_7, window_bounds = array<i64: 1, 1, 128>}, {transform_indices = @transform_8, window_bounds = array<i64: 1, 64, 128>}]} {
    %c0 = arith.constant 0 : index
    %c0_0 = arith.constant 0 : index
    %c0_1 = arith.constant 0 : index
    %0 = vector.load %arg1[%c0, %c0_0, %c0_1] : memref<1x64x128xf32, #tpu.memory_space<vmem>>, vector<1x64x128xf32>
    %1 = vector.shape_cast %0 : vector<1x64x128xf32> to vector<64x128xf32>
    %2 = arith.truncf %1 : vector<64x128xf32> to vector<64x128xbf16>
    %c0_2 = arith.constant 0 : index
    %c0_3 = arith.constant 0 : index
    %3 = vector.load %arg2[%c0_2, %c0_3] : memref<128x64xbf16, #tpu.memory_space<vmem>>, vector<128x64xbf16>
    %cst = arith.constant dense<0.000000e+00> : vector<128x128xf32>
    %4 = tpu.matmul %3, %2, %cst {dimension_numbers = #tpu.dot_dimension_numbers<[1], [0], [0], [1], [0, 0, 1, 1], [], []>} : vector<128x64xbf16>, vector<64x128xbf16>, vector<128x128xf32> -> vector<128x128xf32>
    %c0_4 = arith.constant 0 : index
    %c0_5 = arith.constant 0 : index
    %5 = vector.load %arg3[%c0_4, %c0_5] : memref<128x1xf32, #tpu.memory_space<vmem>>, vector<128x1xf32>
    %6 = vector.broadcast %5 : vector<128x1xf32> to vector<128x128xf32>
    %7 = arith.addf %4, %6 : vector<128x128xf32>
    %cst_6 = arith.constant 0.000000e+00 : f32
    %8 = vector.broadcast %cst_6 : f32 to vector<128x128xf32>
    %9 = arith.maximumf %7, %8 : vector<128x128xf32>
    %c0_7 = arith.constant 0 : index
    %c0_8 = arith.constant 0 : index
    %10 = vector.load %arg10[%c0_7, %c0_8] : memref<128x128xf32, #tpu.memory_space<vmem>>, vector<128x128xf32>
    tpu.vector_store %arg10[%c0_7, %c0_8], %9 {strides = array<i32>} : memref<128x128xf32, #tpu.memory_space<vmem>>, vector<128x128xf32>,
    %c0_9 = arith.constant 0 : index
    %c0_10 = arith.constant 0 : index
    %11 = vector.load %arg10[%c0_9, %c0_10] : memref<128x128xf32, #tpu.memory_space<vmem>>, vector<32x64xf32>
    %c32 = arith.constant 32 : index
    %c0_11 = arith.constant 0 : index
    %12 = vector.load %arg10[%c32, %c0_11] : memref<128x128xf32, #tpu.memory_space<vmem>>, vector<32x64xf32>
    %c64 = arith.constant 64 : index
    %c0_12 = arith.constant 0 : index
    %13 = vector.load %arg10[%c64, %c0_12] : memref<128x128xf32, #tpu.memory_space<vmem>>, vector<64x64xf32>
    %14 = arith.truncf %13 : vector<64x64xf32> to vector<64x64xbf16>
    %cst_13 = arith.constant dense<0xFF800000> : vector<32xf32>
    %15 = vector.multi_reduction <maximumf>, %11, %cst_13 [1] : vector<32x64xf32> to vector<32xf32>
    %16 = vector.shape_cast %15 : vector<32xf32> to vector<32x1xf32>
    %17 = vector.broadcast %16 : vector<32x1xf32> to vector<32x64xf32>
    %18 = arith.subf %11, %17 : vector<32x64xf32>
    %19 = math.exp %18 : vector<32x64xf32>
    %cst_14 = arith.constant dense<0.000000e+00> : vector<32xf32>
    %20 = vector.multi_reduction <add>, %19, %cst_14 [1] : vector<32x64xf32> to vector<32xf32>
    %21 = vector.shape_cast %20 : vector<32xf32> to vector<32x1xf32>
    %cst_15 = arith.constant 1.000000e+00 : f32
    %22 = vector.broadcast %cst_15 : f32 to vector<32x1xf32>
    %23 = arith.divf %22, %21 : vector<32x1xf32>
    %24 = vector.broadcast %23 : vector<32x1xf32> to vector<32x64xf32>
    %25 = arith.mulf %19, %24 : vector<32x64xf32>
    %26 = arith.truncf %25 : vector<32x64xf32> to vector<32x64xbf16>
    %cst_16 = arith.constant dense<0xFF800000> : vector<64xf32>
    %27 = vector.multi_reduction <maximumf>, %12, %cst_16 [0] : vector<32x64xf32> to vector<64xf32>
    %28 = vector.shape_cast %27 : vector<64xf32> to vector<1x64xf32>
    %29 = vector.broadcast %28 : vector<1x64xf32> to vector<32x64xf32>
    %30 = arith.subf %12, %29 : vector<32x64xf32>
    %31 = math.exp %30 : vector<32x64xf32>
    %cst_17 = arith.constant dense<0.000000e+00> : vector<64xf32>
    %32 = vector.multi_reduction <add>, %31, %cst_17 [0] : vector<32x64xf32> to vector<64xf32>
    %33 = vector.shape_cast %32 : vector<64xf32> to vector<1x64xf32>
    %cst_18 = arith.constant 1.000000e+00 : f32
    %34 = vector.broadcast %cst_18 : f32 to vector<1x64xf32>
    %35 = arith.divf %34, %33 : vector<1x64xf32>
    %36 = vector.broadcast %35 : vector<1x64xf32> to vector<32x64xf32>
    %37 = arith.mulf %31, %36 : vector<32x64xf32>
    %38 = arith.truncf %37 : vector<32x64xf32> to vector<32x64xbf16>
    %cst_19 = arith.constant dense<0.000000e+00> : vector<64x32xf32>
    %39 = tpu.matmul %14, %26, %cst_19 {dimension_numbers = #tpu.dot_dimension_numbers<[1], [1], [0], [0], [0, 0, 1, 0], [], []>} : vector<64x64xbf16>, vector<32x64xbf16>, vector<64x32xf32> -> vector<64x32xf32>
    %40 = arith.truncf %39 : vector<64x32xf32> to vector<64x32xbf16>
    %cst_20 = arith.constant dense<0.000000e+00> : vector<64x64xf32>
    %41 = tpu.matmul %40, %38, %cst_20 {dimension_numbers = #tpu.dot_dimension_numbers<[1], [0], [0], [1], [0, 0, 1, 1], [], []>} : vector<64x32xbf16>, vector<32x64xbf16>, vector<64x64xf32> -> vector<64x64xf32>
    %c0_21 = arith.constant 0 : index
    %c0_22 = arith.constant 0 : index
    %42 = vector.load %arg11[%c0_21, %c0_22] : memref<64x128xf32, #tpu.memory_space<vmem>>, vector<64x64xf32>
    tpu.vector_store %arg11[%c0_21, %c0_22], %41 {strides = array<i32>} : memref<64x128xf32, #tpu.memory_space<vmem>>, vector<64x64xf32>,
    %c0_23 = arith.constant 0 : index
    %c64_24 = arith.constant 64 : index
    %43 = vector.load %arg10[%c0_23, %c64_24] : memref<128x128xf32, #tpu.memory_space<vmem>>, vector<32x64xf32>
    %c32_25 = arith.constant 32 : index
    %c64_26 = arith.constant 64 : index
    %44 = vector.load %arg10[%c32_25, %c64_26] : memref<128x128xf32, #tpu.memory_space<vmem>>, vector<32x64xf32>
    %c64_27 = arith.constant 64 : index
    %c64_28 = arith.constant 64 : index
    %45 = vector.load %arg10[%c64_27, %c64_28] : memref<128x128xf32, #tpu.memory_space<vmem>>, vector<64x64xf32>
    %46 = arith.truncf %45 : vector<64x64xf32> to vector<64x64xbf16>
    %cst_29 = arith.constant dense<0xFF800000> : vector<32xf32>
    %47 = vector.multi_reduction <maximumf>, %43, %cst_29 [1] : vector<32x64xf32> to vector<32xf32>
    %48 = vector.shape_cast %47 : vector<32xf32> to vector<32x1xf32>
    %49 = vector.broadcast %48 : vector<32x1xf32> to vector<32x64xf32>
    %50 = arith.subf %43, %49 : vector<32x64xf32>
    %51 = math.exp %50 : vector<32x64xf32>
    %cst_30 = arith.constant dense<0.000000e+00> : vector<32xf32>
    %52 = vector.multi_reduction <add>, %51, %cst_30 [1] : vector<32x64xf32> to vector<32xf32>
    %53 = vector.shape_cast %52 : vector<32xf32> to vector<32x1xf32>
    %cst_31 = arith.constant 1.000000e+00 : f32
    %54 = vector.broadcast %cst_31 : f32 to vector<32x1xf32>
    %55 = arith.divf %54, %53 : vector<32x1xf32>
    %56 = vector.broadcast %55 : vector<32x1xf32> to vector<32x64xf32>
    %57 = arith.mulf %51, %56 : vector<32x64xf32>
    %58 = arith.truncf %57 : vector<32x64xf32> to vector<32x64xbf16>
    %cst_32 = arith.constant dense<0xFF800000> : vector<64xf32>
    %59 = vector.multi_reduction <maximumf>, %44, %cst_32 [0] : vector<32x64xf32> to vector<64xf32>
    %60 = vector.shape_cast %59 : vector<64xf32> to vector<1x64xf32>
    %61 = vector.broadcast %60 : vector<1x64xf32> to vector<32x64xf32>
    %62 = arith.subf %44, %61 : vector<32x64xf32>
    %63 = math.exp %62 : vector<32x64xf32>
    %cst_33 = arith.constant dense<0.000000e+00> : vector<64xf32>
    %64 = vector.multi_reduction <add>, %63, %cst_33 [0] : vector<32x64xf32> to vector<64xf32>
    %65 = vector.shape_cast %64 : vector<64xf32> to vector<1x64xf32>
    %cst_34 = arith.constant 1.000000e+00 : f32
    %66 = vector.broadcast %cst_34 : f32 to vector<1x64xf32>
    %67 = arith.divf %66, %65 : vector<1x64xf32>
    %68 = vector.broadcast %67 : vector<1x64xf32> to vector<32x64xf32>
    %69 = arith.mulf %63, %68 : vector<32x64xf32>
    %70 = arith.truncf %69 : vector<32x64xf32> to vector<32x64xbf16>
    %cst_35 = arith.constant dense<0.000000e+00> : vector<64x32xf32>
    %71 = tpu.matmul %46, %58, %cst_35 {dimension_numbers = #tpu.dot_dimension_numbers<[1], [1], [0], [0], [0, 0, 1, 0], [], []>} : vector<64x64xbf16>, vector<32x64xbf16>, vector<64x32xf32> -> vector<64x32xf32>
    %72 = arith.truncf %71 : vector<64x32xf32> to vector<64x32xbf16>
    %cst_36 = arith.constant dense<0.000000e+00> : vector<64x64xf32>
    %73 = tpu.matmul %72, %70, %cst_36 {dimension_numbers = #tpu.dot_dimension_numbers<[1], [0], [0], [1], [0, 0, 1, 1], [], []>} : vector<64x32xbf16>, vector<32x64xbf16>, vector<64x64xf32> -> vector<64x64xf32>
    %c0_37 = arith.constant 0 : index
    %c64_38 = arith.constant 64 : index
    %74 = vector.load %arg11[%c0_37, %c64_38] : memref<64x128xf32, #tpu.memory_space<vmem>>, vector<64x64xf32>
    tpu.vector_store %arg11[%c0_37, %c64_38], %73 {strides = array<i32>} : memref<64x128xf32, #tpu.memory_space<vmem>>, vector<64x64xf32>,
    %c0_39 = arith.constant 0 : index
    %c0_40 = arith.constant 0 : index
    %75 = vector.load %arg11[%c0_39, %c0_40] : memref<64x128xf32, #tpu.memory_space<vmem>>, vector<64x128xf32>
    %c0_41 = arith.constant 0 : index
    %c0_42 = arith.constant 0 : index
    %76 = vector.load %arg4[%c0_41, %c0_42] : memref<64x64xbf16, #tpu.memory_space<vmem>>, vector<64x64xbf16>
    %77 = arith.truncf %75 : vector<64x128xf32> to vector<64x128xbf16>
    %cst_43 = arith.constant dense<0.000000e+00> : vector<64x128xf32>
    %78 = tpu.matmul %76, %77, %cst_43 {dimension_numbers = #tpu.dot_dimension_numbers<[1], [0], [0], [1], [0, 0, 1, 1], [], []>} : vector<64x64xbf16>, vector<64x128xbf16>, vector<64x128xf32> -> vector<64x128xf32>
    %c0_44 = arith.constant 0 : index
    %c0_45 = arith.constant 0 : index
    %79 = vector.load %arg5[%c0_44, %c0_45] : memref<64x1xf32, #tpu.memory_space<vmem>>, vector<64x1xf32>
    %80 = vector.broadcast %79 : vector<64x1xf32> to vector<64x128xf32>
    %81 = arith.addf %78, %80 : vector<64x128xf32>
    %cst_46 = arith.constant 0.000000e+00 : f32
    %82 = vector.broadcast %cst_46 : f32 to vector<64x128xf32>
    %83 = arith.maximumf %81, %82 : vector<64x128xf32>
    %84 = arith.addf %83, %1 : vector<64x128xf32>
    %c0_47 = arith.constant 0 : index
    %c0_48 = arith.constant 0 : index
    %85 = vector.load %arg6[%c0_47, %c0_48] : memref<1x64xbf16, #tpu.memory_space<vmem>>, vector<1x64xbf16>
    %86 = arith.truncf %84 : vector<64x128xf32> to vector<64x128xbf16>
    %cst_49 = arith.constant dense<0.000000e+00> : vector<1x128xf32>
    %87 = tpu.matmul %85, %86, %cst_49 {dimension_numbers = #tpu.dot_dimension_numbers<[1], [0], [0], [1], [0, 0, 1, 1], [], []>} : vector<1x64xbf16>, vector<64x128xbf16>, vector<1x128xf32> -> vector<1x128xf32>
    %c0_50 = arith.constant 0 : index
    %c0_51 = arith.constant 0 : index
    %88 = memref.load %arg7[%c0_50, %c0_51] : memref<1x1xf32, #tpu.memory_space<smem>>
    %89 = vector.broadcast %88 : f32 to vector<1x128xf32>
    %90 = arith.addf %87, %89 : vector<1x128xf32>
    %c0_52 = arith.constant 0 : index
    %c0_53 = arith.constant 0 : index
    %c0_54 = arith.constant 0 : index
    %91 = vector.load %arg8[%c0_52, %c0_53, %c0_54] : memref<1x1x128xf32, #tpu.memory_space<vmem>>, vector<1x1x128xf32>
    %92 = vector.shape_cast %91 : vector<1x1x128xf32> to vector<1x128xf32>
    %93 = vector.shape_cast %90 : vector<1x128xf32> to vector<1x1x128xf32>
    tpu.vector_store %arg8[%c0_52, %c0_53, %c0_54], %93 {strides = array<i32>} : memref<1x1x128xf32, #tpu.memory_space<vmem>>, vector<1x1x128xf32>,
    %94 = arith.mulf %84, %1 : vector<64x128xf32>
    %c0_55 = arith.constant 0 : index
    %c0_56 = arith.constant 0 : index
    %c0_57 = arith.constant 0 : index
    %95 = vector.load %arg9[%c0_55, %c0_56, %c0_57] : memref<1x64x128xf32, #tpu.memory_space<vmem>>, vector<1x64x128xf32>
    %96 = vector.shape_cast %95 : vector<1x64x128xf32> to vector<64x128xf32>
    %97 = vector.shape_cast %94 : vector<64x128xf32> to vector<1x64x128xf32>
    tpu.vector_store %arg9[%c0_55, %c0_56, %c0_57], %97 {strides = array<i32>} : memref<1x64x128xf32, #tpu.memory_space<vmem>>, vector<1x64x128xf32>,
    return
  }
  func.func @transform_0(%arg0: i32) -> (i32, i32, i32) {
    %c0_i32 = arith.constant 0 : i32
    %c0_i32_0 = arith.constant 0 : i32
    %c0_i32_1 = arith.constant 0 : i32
    return %arg0, %c0_i32, %c0_i32_0 : i32, i32, i32
  }
  func.func @transform_1(%arg0: i32) -> (i32, i32) {
    %c0_i32 = arith.constant 0 : i32
    %c0_i32_0 = arith.constant 0 : i32
    %c0_i32_1 = arith.constant 0 : i32
    return %c0_i32, %c0_i32_0 : i32, i32
  }
  func.func @transform_2(%arg0: i32) -> (i32, i32) {
    %c0_i32 = arith.constant 0 : i32
    %c0_i32_0 = arith.constant 0 : i32
    %c0_i32_1 = arith.constant 0 : i32
    return %c0_i32, %c0_i32_0 : i32, i32
  }
  func.func @transform_3(%arg0: i32) -> (i32, i32) {
    %c0_i32 = arith.constant 0 : i32
    %c0_i32_0 = arith.constant 0 : i32
    %c0_i32_1 = arith.constant 0 : i32
    return %c0_i32, %c0_i32_0 : i32, i32
  }
  func.func @transform_4(%arg0: i32) -> (i32, i32) {
    %c0_i32 = arith.constant 0 : i32
    %c0_i32_0 = arith.constant 0 : i32
    %c0_i32_1 = arith.constant 0 : i32
    return %c0_i32, %c0_i32_0 : i32, i32
  }
  func.func @transform_5(%arg0: i32) -> (i32, i32) {
    %c0_i32 = arith.constant 0 : i32
    %c0_i32_0 = arith.constant 0 : i32
    %c0_i32_1 = arith.constant 0 : i32
    return %c0_i32, %c0_i32_0 : i32, i32
  }
  func.func @transform_6(%arg0: i32) -> (i32, i32) {
    %c0_i32 = arith.constant 0 : i32
    %c0_i32_0 = arith.constant 0 : i32
    %c0_i32_1 = arith.constant 0 : i32
    return %c0_i32, %c0_i32_0 : i32, i32
  }
  func.func @transform_7(%arg0: i32) -> (i32, i32, i32) {
    %c0_i32 = arith.constant 0 : i32
    %c0_i32_0 = arith.constant 0 : i32
    %c0_i32_1 = arith.constant 0 : i32
    return %arg0, %c0_i32, %c0_i32_0 : i32, i32, i32
  }
  func.func @transform_8(%arg0: i32) -> (i32, i32, i32) {
    %c0_i32 = arith.constant 0 : i32
    %c0_i32_0 = arith.constant 0 : i32
    %c0_i32_1 = arith.constant 0 : i32
    return %arg0, %c0_i32, %c0_i32_0 : i32, i32, i32
  }
}

</mosaic_0001>

<bundles_post_ra>
// kernel: tpu_custom_call.1
= control target key start
LH: loop header
LB: loop body
LE: loop exit
PB: predicated region body
PF: predicated region fallthrough
CT: control target
= control target key end

     0   :  { %15 = vsyncpa [#allocation6], 0  ;;  %v1604_v5 = vmov 0   ;;  %vm196_vm0 = vcmask 523264   ;;  %s2044_s0 = inlined_call_operand.vmem [shape: f32[1,64,128], index: 0, kind: input, shape index: {}]   ;;  %s2045_s1 = inlined_call_operand.vmem [shape: bf16[128,64], index: 1, kind: input, shape index: {}]   ;;  %s2046_s2 = inlined_call_operand.vmem [shape: f32[128,1], index: 2, kind: input, shape index: {}]   ;;  %s2047_s3 = inlined_call_operand.vmem [shape: bf16[64,64], index: 3, kind: input, shape index: {}]   ;;  %s2048_s4 = inlined_call_operand.vmem [shape: f32[64,1], index: 4, kind: input, shape index: {}]   ;;  %s2049_s5 = inlined_call_operand.vmem [shape: bf16[1,64], index: 5, kind: input, shape index: {}]   ;;  %s2050_s6 = inlined_call_operand.<no memory space> [shape: f32[1,1], index: 6, kind: input, shape index: {}]   ;;  %s2051_s7 = inlined_call_operand.hbm [shape: f32[1,1,128], index: 7, kind: output, shape index: {0}]   ;;  %s2052_s8 = inlined_call_operand.hbm [shape: f32[1,64,128], index: 8, kind: output, shape index: {1}]  }
   0x1   :  { %v32_v0 = vld [vmem:[%s2044_s0] sm:$0xff]  ;;  %v33_v1 = vld [vmem:[%s2044_s0 + $0x8] sm:$0xff]  ;;  %v34_v2 = vld [vmem:[%s2044_s0 + $0x10] sm:$0xff]  ;;  %1482 = vset.pattern.permute.xlu0 %v1604_v5  ;;  %1483 = vset.pattern.permute.xlu1 %v1604_v5 }
   0x2   :  { %v40_v3 = vpack.c.bf16 %v33_v1, %v32_v0  ;;  %v35_v4 = vld [vmem:[%s2044_s0 + $0x18] sm:$0xff]  ;;  %v36_v7 = vld [vmem:[%s2044_s0 + $0x20] sm:$0xff]  ;;  %v37_v8 = vld [vmem:[%s2044_s0 + $0x28] sm:$0xff] }
   0x3   :  { %v41_v6 = vpack.c.bf16 %v35_v4, %v34_v2  ;;  %v1484_v9 = vld [vmem:[%s2045_s1] sm:$0xff]   ;;  %v38_v10 = vld [vmem:[%s2044_s0 + $0x30] sm:$0xff]  ;;  %v39_v11 = vld [vmem:[%s2044_s0 + $0x38] sm:$0xff]  ;;  %v42_v13 = vpack.c.bf16 %v37_v8, %v36_v7 }
   0x4   :  { %1370 = vmatprep.subr.bf16.mxu0 %v40_v3  ;;  %v60_v12 = vld [vmem:[%s2046_s2] sm:$0xff]  ;;  %1378 = vmatprep.mubr.msk.bf16.mxu0 %vm196_vm0, %v1484_v9  ;;  %v62_v14 = vld [vmem:[%s2046_s2 + $0x10] sm:$0xff]  ;;  %v61_v15 = vld [vmem:[%s2046_s2 + $0x8] sm:$0xff]  ;;  %v43_v17 = vpack.c.bf16 %v39_v11, %v38_v10 }
   0x5   :  { %1371 = vmatpush3.bf16.msra.mxu0 %v40_v3  ;;  %v63_v16 = vld [vmem:[%s2046_s2 + $0x18] sm:$0xff]  ;;  %78 = vperm.xlu0 %1482, %v60_v12  }
   0x6   :  { %1372 = vmatprep.subr.bf16.mxu0 %v41_v6  ;;  %88 = vperm.xlu1 %1483, %v62_v14  }
   0x9   :  { %1373 = vmatpush3.bf16.msra.mxu0 %v41_v6  ;;  %83 = vperm.xlu0 %1482, %v61_v15  }
   0xa   :  { %1374 = vmatprep.subr.bf16.mxu0 %v42_v13  ;;  %93 = vperm.xlu1 %1483, %v63_v16  }
   0xd   :  { %1375 = vmatpush3.bf16.msra.mxu0 %v42_v13 }
   0xe   :  { %16 = vsyncpa [#allocation8], 0  ;;  %1376 = vmatprep.subr.bf16.mxu0 %v43_v17  ;;  %v1485_v18 = vld [vmem:[%s2045_s1 + $0x8] sm:$0xff]   ;;  %v1486_v19 = vld [vmem:[%s2045_s1 + $0x10] sm:$0xff]   ;;  %vm659_vm1 = vcmask 1048064   ;;  %vm553_vm2 = vcmask 261120  }
   0xf   :  { %v1487_v20 = vld [vmem:[%s2045_s1 + $0x18] sm:$0xff]   ;;  %v1488_v21 = vld [vmem:[%s2045_s1 + $0x20] sm:$0xff]   ;;  %v1489_v22 = vld [vmem:[%s2045_s1 + $0x28] sm:$0xff]   ;;  %vm1607_vm3 = vmmov 0  }
  0x10   :  { %v1490_v23 = vld [vmem:[%s2045_s1 + $0x30] sm:$0xff]   ;;  %v1491_v24 = vld [vmem:[%s2045_s1 + $0x38] sm:$0xff]   ;;  %s1605_s1 = smov 64   ;;  %v69_v6 = vld [vmem:[%s2046_s2 + $0x48] sm:$0xff] }
  0x11   :  { %1377 = vmatpush3.bf16.msra.mxu0 %v43_v17  ;;  %v72_v10 = vld [vmem:[%s2046_s2 + $0x60] sm:$0xff]  ;;  %v70_v14 = vld [vmem:[%s2046_s2 + $0x50] sm:$0xff]  ;;  %v71_v15 = vld [vmem:[%s2046_s2 + $0x58] sm:$0xff] }
  0x12   :  { %v68_v13 = vld [vmem:[%s2046_s2 + $0x40] sm:$0xff]  ;;  %v73_v16 = vld [vmem:[%s2046_s2 + $0x68] sm:$0xff] }
  0x14   :  { %1379 = vmatmul.mubr.msk.bf16.vlgmr.msra.gmra.mrb[0].mxu0 %vm196_vm0, %v1485_v18 }
  0x15   :  { %1382 = vmatprep.mubr.msk.bf16.mxu0 %vm196_vm0, %v1486_v19 }
  0x1c   :  { %1383 = vmatmul.mubr.msk.bf16.gmra.mrb[4].mxu0 %vm196_vm0, %v1487_v20 }
  0x1d   :  { %1386 = vmatprep.mubr.msk.bf16.mxu0 %vm196_vm0, %v1488_v21 }
  0x24   :  { %1387 = vmatmul.mubr.msk.bf16.gmra.mrb[8].mxu0 %vm196_vm0, %v1489_v22 }
  0x25   :  { %1390 = vmatprep.mubr.msk.bf16.mxu0 %vm196_vm0, %v1490_v23 }
  0x2c   :  { %1391 = vmatmul.mubr.msk.bf16.gmra.mrb[12].mxu0 %vm196_vm0, %v1491_v24 }
  0x84   :  { %v79_v25 = vpop.permute.xlu0 %78 }
  0x85   :  { %v89_v26 = vpop.permute.xlu1 %88 }
  0x88   :  { %v84_v30 = vpop.permute.xlu0 %83 }
  0x89   :  { %v94_v33 = vpop.permute.xlu1 %93 }
  0xe7   :  { %v1380_v27 = vpop.f32.mrb[0].mxu0 }
  0xe8   :  { %v255_v28 = vpop.f32.mrb[1].mxu0  ;;  %v264_v29 = vadd.f32 %v1380_v27, %v89_v26 }
  0xe9   :  { %v256_v31 = vadd.f32 %v255_v28, %v79_v25  ;;  %v1381_v32 = vpop.f32.mrb[2].mxu0 }
  0xea   :  { %v258_v34 = vpop.f32.mrb[3].mxu0  ;;  %v1727_v37 = vmax.f32 %v264_v29, 0.0  ;;  %v267_v38 = vadd.f32 %v1381_v32, %v94_v33  ;;  %v75_v29 = vld [vmem:[%s2046_s2 + $0x78] sm:$0xff] }
  0xeb   :  { %v1725_v35 = vmax.f32 %v256_v31, 0.0  ;;  %v259_v36 = vadd.f32 %v258_v34, %v84_v30  ;;  %v74_v30 = vld [vmem:[%s2046_s2 + $0x70] sm:$0xff] }
  0xec   :  { %v1735_v42 = vmax.f32 %v267_v38, 0.0  ;;  %v666_v43 = vsel %vm659_vm1, %v1727_v37, -inf  ;;  %v376_v46 = vsel %vm196_vm0, %v1727_v37, -inf }
  0xed   :  { %v1729_v39 = vmax.f32 %v259_v36, 0.0  ;;  %v660_v40 = vsel %vm659_vm1, %v1725_v35, -inf  ;;  %v370_v45 = vsel %vm196_vm0, %v1725_v35, -inf }
  0xee   :  { %661 = vmax.xlane.f32.xlu0 %v660_v40  ;;  %v669_v44 = vsel %vm659_vm1, %v1735_v42, -inf  ;;  %v379_v63 = vsel %vm196_vm0, %v1735_v42, -inf }
  0xef   :  { %v663_v41 = vsel %vm659_vm1, %v1729_v39, -inf  ;;  %v373_v0 = vsel %vm196_vm0, %v1729_v39, -inf  ;;  %v1769_v1 = vpop.f32.mrb[4].mxu0 }
  0xf0   :  { %664 = vmax.xlane.f32.xlu1 %v663_v41  ;;  %v1771_v2 = vpop.f32.mrb[5].mxu0 }
  0xf1   :  { %v1773_v3 = vpop.f32.mrb[6].mxu0 }
  0xf2   :  { %667 = vmax.xlane.f32.xlu0 %v666_v43  ;;  %v1775_v4 = vpop.f32.mrb[7].mxu0 }
  0xf6   :  { %670 = vmax.xlane.f32.xlu0 %v669_v44 }
  0xf7   :  { %v1777_v5 = vpop.f32.mrb[8].mxu0 }
  0xf8   :  { %v287_v7 = vpop.f32.mrb[9].mxu0 }
  0xf9   :  { %v1782_v8 = vpop.f32.mrb[10].mxu0 }
  0xfa   :  { %371 = vmax.xlane.f32.xlu0 %v370_v45  ;;  %v290_v9 = vpop.f32.mrb[11].mxu0 }
  0xfe   :  { %377 = vmax.xlane.f32.xlu0 %v376_v46 }
  0xff   :  { %v1787_v11 = vpop.f32.mrb[12].mxu0 }
 0x100   :  { %v1789_v12 = vpop.f32.mrb[13].mxu0 }
 0x101   :  { %v1803_v17 = vpop.f32.mrb[14].mxu0 }
 0x102   :  { %v306_v18 = vpop.f32.mrb[15].mxu0 }
 0x17b   :  { %v662_v47 = vpop.xlane.xlu0 %661 }
 0x17c   :  { %v672_v51 = vsub.f32 %v1725_v35, %v662_v47 }
 0x17d   :  { %v665_v48 = vpop.xlane.xlu1 %664 }
 0x17e   :  { %v673_v49 = vsub.f32 %v1729_v39, %v665_v48  ;;  %v676_v56 = vmul.f32 1.442695, %v672_v51 }
 0x17f   :  { %v668_v50 = vpop.xlane.xlu0 %667 }
 0x180   :  { %v678_v52 = vmul.f32 1.442695, %v673_v49  ;;  %v674_v53 = vsub.f32 %v1727_v37, %v668_v50 }
 0x182   :  { %1496 = vpow2.f32 %v678_v52  ;;  %v680_v54 = vmul.f32 1.442695, %v674_v53 }
 0x183   :  { %v671_v55 = vpop.xlane.xlu0 %670 }
 0x184   :  { %1498 = vpow2.f32 %v680_v54  ;;  %v675_v57 = vsub.f32 %v1735_v42, %v671_v55 }
 0x185   :  { %1500 = vpow2.f32 %v676_v56 }
 0x186   :  { %v682_v58 = vmul.f32 1.442695, %v675_v57 }
 0x187   :  { %v372_v19 = vpop.xlane.xlu0 %371 }
 0x188   :  { %1502 = vpow2.f32 %v682_v58  ;;  %v382_v31 = vsub.f32 %v1725_v35, %v372_v19 }
 0x18a   :  { %v386_v32 = vmul.f32 1.442695, %v382_v31 }
 0x18b   :  { %v378_v24 = vpop.xlane.xlu0 %377 }
 0x18c   :  { %v1749_v59 = vpop.eup %1496  ;;  %v384_v33 = vsub.f32 %v1727_v37, %v378_v24  ;;  %1504 = vpow2.f32 %v386_v32 }
 0x18d   :  { %690 = vrot.lane.b32.xlu0 %v1749_v59, %s1605_s1 }
 0x18e   :  { %v1753_v60 = vpop.eup %1498  ;;  %v390_v34 = vmul.f32 1.442695, %v384_v33 }
 0x18f   :  { %692 = vrot.lane.b32.xlu1 %v1753_v60, %s1605_s1  ;;  %v1757_v61 = vpop.eup %1500 }
 0x190   :  { %1506 = vpow2.f32 %v390_v34 }
 0x192   :  { %v1761_v62 = vpop.eup %1502 }
 0x193   :  { %688 = vrot.lane.b32.xlu1 %v1757_v61, %s1605_s1 }
 0x196   :  { %v1818_v41 = vpop.eup %1504 }
 0x197   :  { %694 = vrot.lane.b32.xlu1 %v1761_v62, %s1605_s1  ;;  %v394_v43 = vsel %vm196_vm0, %v1818_v41, 0.0 }
 0x19a   :  { %v1822_v44 = vpop.eup %1506 }
 0x19b   :  { %v400_v35 = vsel %vm196_vm0, %v1822_v44, 0.0 }
 0x1ac   :  { %380 = vmax.xlane.f32.xlu0 %v379_v63 }
 0x1bb   :  { %374 = vmax.xlane.f32.xlu1 %v373_v0 }
 0x1c2   :  { %123 = vperm.xlu0 %1482, %v69_v6  }
 0x1c6   :  { %138 = vperm.xlu0 %1482, %v72_v10  }
 0x1cc   :  { %118 = vperm.xlu1 %1483, %v68_v13  }
 0x1d0   :  { %128 = vperm.xlu1 %1483, %v70_v14  }
 0x1d4   :  { %133 = vperm.xlu1 %1483, %v71_v15  }
 0x1d8   :  { %143 = vperm.xlu1 %1483, %v73_v16  }
 0x1ff   :  { %v691_v27 = vpop.permute.xlu0 %690 }
 0x200   :  { %v703_v28 = vsel %vm196_vm0, %v691_v27, 0.0 }
 0x201   :  { %v693_v20 = vpop.permute.xlu1 %692 }
 0x202   :  { %v706_v21 = vsel %vm196_vm0, %v693_v20, 0.0 }
 0x203   :  { %707 = vadd.xlane.f32.xlu1 %v706_v21 }
 0x205   :  { %v689_v22 = vpop.permute.xlu1 %688 }
 0x206   :  { %v700_v23 = vsel %vm196_vm0, %v689_v22, 0.0 }
 0x207   :  { %701 = vadd.xlane.f32.xlu1 %v700_v23 }
 0x209   :  { %v695_v25 = vpop.permute.xlu1 %694 }
 0x20a   :  { %v709_v26 = vsel %vm196_vm0, %v695_v25, 0.0 }
 0x20b   :  { %710 = vadd.xlane.f32.xlu0 %v709_v26 }
 0x20f   :  { %704 = vadd.xlane.f32.xlu0 %v703_v28 }
 0x218   :  { %153 = vperm.xlu1 %1483, %v75_v29  }
 0x225   :  { %148 = vperm.xlu0 %1482, %v74_v30  }
 0x239   :  { %v381_v36 = vpop.xlane.xlu0 %380 }
 0x23a   :  { %v385_v38 = vsub.f32 %v1735_v42, %v381_v36 }
 0x23c   :  { %v392_v40 = vmul.f32 1.442695, %v385_v38 }
 0x23e   :  { %1508 = vpow2.f32 %v392_v40 }
 0x241   :  { %v124_v45 = vpop.permute.xlu0 %123 }
 0x242   :  { %v291_v47 = vadd.f32 %v290_v9, %v124_v45 }
 0x244   :  { %395 = vadd.xlane.f32.xlu0 %v394_v43  ;;  %v327_v52 = vmax.f32 %v291_v47, 0.0 }
 0x245   :  { %v139_v57 = vpop.permute.xlu0 %138 }
 0x246   :  { %v304_v0 = vadd.f32 %v1789_v12, %v139_v57 }
 0x248   :  { %v1826_v37 = vpop.eup %1508  ;;  %v375_v46 = vpop.xlane.xlu1 %374  ;;  %401 = vadd.xlane.f32.xlu0 %v400_v35 }
 0x249   :  { %v383_v42 = vsub.f32 %v1729_v39, %v375_v46  ;;  %v403_v49 = vsel %vm196_vm0, %v1826_v37, 0.0 }
 0x24b   :  { %v388_v48 = vmul.f32 1.442695, %v383_v42 }
 0x24c   :  { %v119_v50 = vpop.permute.xlu1 %118  ;;  %404 = vadd.xlane.f32.xlu0 %v403_v49 }
 0x24d   :  { %1510 = vpow2.f32 %v388_v48  ;;  %v288_v51 = vadd.f32 %v287_v7, %v119_v50 }
 0x24f   :  { %v326_v53 = vmax.f32 %v288_v51, 0.0 }
 0x250   :  { %v129_v54 = vpop.permute.xlu1 %128 }
 0x251   :  { %v366_v55 = vpack.c.bf16 %v327_v52, %v326_v53  ;;  %v296_v56 = vadd.f32 %v1777_v5, %v129_v54  ;;  %v330_v5 = vmax.f32 %v304_v0, 0.0 }
 0x253   :  { %1398 = vmatprep.mubr.msk.bf16.mxu1 %vm196_vm0, %v366_v55  ;;  %v328_v6 = vmax.f32 %v296_v56, 0.0 }
 0x254   :  { %v134_v58 = vpop.permute.xlu1 %133 }
 0x255   :  { %v299_v39 = vadd.f32 %v1782_v8, %v134_v58 }
 0x257   :  { %v1834_v63 = vpop.eup %1510  ;;  %v329_v9 = vmax.f32 %v299_v39, 0.0 }
 0x258   :  { %v144_v10 = vpop.permute.xlu1 %143  ;;  %v397_v7 = vsel %vm196_vm0, %v1834_v63, 0.0 }
 0x259   :  { %v1839_v13 = vpack.c.bf16 %v329_v9, %v328_v6  ;;  %v307_v14 = vadd.f32 %v306_v18, %v144_v10  ;;  %398 = vadd.xlane.f32.xlu1 %v397_v7 }
 0x25b   :  { %v331_v15 = vmax.f32 %v307_v14, 0.0 }
 0x25d   :  { %v1841_v16 = vpack.c.bf16 %v331_v15, %v330_v5 }
 0x290   :  { %v708_v19 = vpop.xlane.xlu1 %707 }
 0x291   :  { %1512 = vrcp.f32 %v708_v19 }
 0x294   :  { %v702_v8 = vpop.xlane.xlu1 %701 }
 0x298   :  { %v711_v20 = vpop.xlane.xlu0 %710  ;;  %v154_v21 = vpop.permute.xlu1 %153 }
 0x299   :  { %1514 = vrcp.f32 %v711_v20  ;;  %v315_v24 = vadd.f32 %v1803_v17, %v154_v21 }
 0x29a   :  { %1516 = vrcp.f32 %v702_v8 }
 0x29b   :  { %v1513_v22 = vpop.eup %1512  ;;  %v333_v31 = vmax.f32 %v315_v24, 0.0 }
 0x29c   :  { %v705_v12 = vpop.xlane.xlu0 %704  ;;  %v722_v18 = vmul.f32 %v1513_v22, %v1753_v60  ;;  %v64_v60 = vld [vmem:[%s2046_s2 + $0x20] sm:$0xff] }
 0x29d   :  { %1518 = vrcp.f32 %v705_v12 }
 0x2a3   :  { %v1515_v23 = vpop.eup %1514 }
 0x2a4   :  { %v149_v25 = vpop.permute.xlu0 %148  ;;  %v723_v26 = vmul.f32 %v1515_v23, %v1761_v62  ;;  %v1517_v27 = vpop.eup %1516  ;;  %v67_v62 = vld [vmem:[%s2046_s2 + $0x38] sm:$0xff] }
 0x2a5   :  { %v312_v28 = vadd.f32 %v1787_v11, %v149_v25  ;;  %v720_v33 = vmul.f32 %v1517_v27, %v1757_v61  ;;  %v66_v61 = vld [vmem:[%s2046_s2 + $0x30] sm:$0xff] }
 0x2a6   :  { %v725_v29 = vpack.c.bf16 %v723_v26, %v722_v18 }
 0x2a7   :  { %v1519_v30 = vpop.eup %1518  ;;  %v332_v32 = vmax.f32 %v312_v28, 0.0 }
 0x2a8   :  { %788 = vrot.lane.b32.xlu0 %v725_v29, %s1605_s1  ;;  %v721_v34 = vmul.f32 %v1519_v30, %v1749_v59  ;;  %v65_v59 = vld [vmem:[%s2046_s2 + $0x28] sm:$0xff] }
 0x2a9   :  { %v369_v36 = vpack.c.bf16 %v333_v31, %v332_v32 }
 0x2aa   :  { %v724_v17 = vpack.c.bf16 %v721_v34, %v720_v33 }
 0x2ac   :  { %780 = vrot.lane.b32.xlu0 %v1841_v16, %s1605_s1  ;;  %786 = vrot.lane.b32.xlu1 %v724_v17, %s1605_s1 }
 0x2b0   :  { %98 = vperm.xlu0 %1482, %v64_v60   ;;  %776 = vrot.lane.b32.xlu1 %v366_v55, %s1605_s1 }
 0x2b4   :  { %108 = vperm.xlu0 %1482, %v66_v61   ;;  %778 = vrot.lane.b32.xlu1 %v1839_v13, %s1605_s1 }
 0x2b8   :  { %782 = vrot.lane.b32.xlu1 %v369_v36, %s1605_s1 }
 0x2bc   :  { %103 = vperm.xlu1 %1483, %v65_v59  }
 0x2c0   :  { %113 = vperm.xlu1 %1483, %v67_v62  }
 0x2d1   :  { %v396_v11 = vpop.xlane.xlu0 %395 }
 0x2d2   :  { %1520 = vrcp.f32 %v396_v11 }
 0x2d5   :  { %v402_v38 = vpop.xlane.xlu0 %401 }
 0x2d9   :  { %v405_v40 = vpop.xlane.xlu0 %404 }
 0x2da   :  { %1522 = vrcp.f32 %v405_v40 }
 0x2db   :  { %1524 = vrcp.f32 %v402_v38 }
 0x2dc   :  { %v1521_v35 = vpop.eup %1520 }
 0x2dd   :  { %v414_v47 = vmul.f32 %v1521_v35, %v1818_v41 }
 0x2e4   :  { %v1523_v45 = vpop.eup %1522 }
 0x2e5   :  { %v1525_v46 = vpop.eup %1524  ;;  %v417_v49 = vmul.f32 %v1523_v45, %v1826_v37 }
 0x2e6   :  { %v399_v43 = vpop.xlane.xlu1 %398  ;;  %v416_v51 = vmul.f32 %v1525_v46, %v1822_v44 }
 0x2e7   :  { %1526 = vrcp.f32 %v399_v43 }
 0x2e8   :  { %v419_v53 = vpack.c.bf16 %v417_v49, %v416_v51 }
 0x2ea   :  { %v482_v54 = vsel %vm196_vm0, %v419_v53, 0 }
 0x2f1   :  { %v1527_v42 = vpop.eup %1526 }
 0x2f2   :  { %v415_v48 = vmul.f32 %v1527_v42, %v1834_v63 }
 0x2f4   :  { %v418_v50 = vpack.c.bf16 %v415_v48, %v414_v47 }
 0x2f6   :  { %1470 = vmatprep.subr.msk.bf16.mxu1 %vm196_vm0, %v418_v50  ;;  %v479_v52 = vsel %vm196_vm0, %v418_v50, 0 }
 0x2f7   :  { %1395 = vmatpush3.bf16.xpose.msra.mxu1 %v479_v52 }
 0x2f8   :  { %1471 = vmatprep.subr.msk.bf16.mxu1 %vm196_vm0, %v419_v53 }
 0x2ff   :  { %1397 = vmatpush3.bf16.xpose.msra.mxu1 %v482_v54 }
 0x306   :  { %1399 = vmatmul.mubr.msk.bf16.vlgmr.msra.gmra.mrb[0].mxu1 %vm196_vm0, %v1839_v13 }
 0x307   :  { %1402 = vmatprep.mubr.msk.bf16.mxu1 %vm196_vm0, %v1841_v16 }
 0x30e   :  { %1403 = vmatmul.mubr.msk.bf16.gmra.mrb[4].mxu1 %vm196_vm0, %v369_v36 }
 0x31a   :  { %v789_v37 = vpop.permute.xlu0 %788 }
 0x31b   :  { %v806_v56 = vsel %vm196_vm0, %v789_v37, 0 }
 0x31e   :  { %v787_v41 = vpop.permute.xlu1 %786  ;;  %v781_v58 = vpop.permute.xlu0 %780 }
 0x31f   :  { %v803_v44 = vsel %vm196_vm0, %v787_v41, 0  ;;  %1472 = vmatprep.subr.msk.bf16.mxu0 %vm196_vm0, %v787_v41 }
 0x320   :  { %1419 = vmatpush3.bf16.xpose.msra.mxu0 %v803_v44 }
 0x321   :  { %1473 = vmatprep.subr.msk.bf16.mxu0 %vm196_vm0, %v789_v37 }
 0x322   :  { %v777_v55 = vpop.permute.xlu1 %776 }
 0x323   :  { %1422 = vmatprep.mubr.msk.bf16.mxu0 %vm196_vm0, %v777_v55 }
 0x326   :  { %v779_v57 = vpop.permute.xlu1 %778 }
 0x328   :  { %1421 = vmatpush3.bf16.xpose.msra.mxu0 %v806_v56 }
 0x32a   :  { %v783_v63 = vpop.permute.xlu1 %782 }
 0x32f   :  { %1423 = vmatmul.mubr.msk.bf16.vlgmr.msra.gmra.mrb[16].mxu0 %vm196_vm0, %v779_v57  ;;  %v99_v39 = vpop.permute.xlu0 %98 }
 0x330   :  { %1426 = vmatprep.mubr.msk.bf16.mxu0 %vm196_vm0, %v781_v58  ;;  %v272_v0 = vadd.f32 %v1771_v2, %v99_v39 }
 0x332   :  { %v322_v9 = vmax.f32 %v272_v0, 0.0 }
 0x333   :  { %v109_v6 = vpop.permute.xlu0 %108 }
 0x334   :  { %v280_v7 = vadd.f32 %v1769_v1, %v109_v6  ;;  %v420_v5 = vsel %vm196_vm0, %v322_v9, -inf  ;;  %v726_v15 = vsel %vm659_vm1, %v322_v9, -inf }
 0x336   :  { %v324_v19 = vmax.f32 %v280_v7, 0.0 }
 0x337   :  { %1427 = vmatmul.mubr.msk.bf16.gmra.mrb[20].mxu0 %vm196_vm0, %v783_v63 }
 0x338   :  { %v422_v1 = vsel %vm196_vm0, %v324_v19, -inf }
 0x33b   :  { %v104_v10 = vpop.permute.xlu1 %103 }
 0x33c   :  { %v275_v13 = vadd.f32 %v1775_v4, %v104_v10  ;;  %v728_v4 = vsel %vm659_vm1, %v324_v19, -inf }
 0x33e   :  { %v323_v14 = vmax.f32 %v275_v13, 0.0 }
 0x33f   :  { %v114_v16 = vpop.permute.xlu1 %113 }
 0x340   :  { %v421_v8 = vsel %vm196_vm0, %v323_v14, -inf  ;;  %v727_v2 = vsel %vm659_vm1, %v323_v14, -inf  ;;  %v283_v20 = vadd.f32 %v1773_v3, %v114_v16 }
 0x341   :  { %v424_v12 = vmax.f32 %v420_v5, %v421_v8  ;;  %v730_v21 = vmax.f32 %v726_v15, %v727_v2 }
 0x342   :  { %v325_v22 = vmax.f32 %v283_v20, 0.0 }
 0x344   :  { %v423_v23 = vsel %vm196_vm0, %v325_v22, -inf  ;;  %v729_v24 = vsel %vm659_vm1, %v325_v22, -inf }
 0x345   :  { %v425_v25 = vmax.f32 %v422_v1, %v423_v23  ;;  %v731_v18 = vmax.f32 %v728_v4, %v729_v24 }
 0x347   :  { %v426_v26 = vmax.f32 %v424_v12, %v425_v25  ;;  %v732_v27 = vmax.f32 %v730_v21, %v731_v18 }
 0x349   :  { %v427_v28 = vrot.slane %v426_v26, 4  ;;  %v733_v29 = vrot.slane %v732_v27, 4 }
 0x34b   :  { %v428_v30 = vmax.f32 %v426_v26, %v427_v28  ;;  %v734_v31 = vmax.f32 %v732_v27, %v733_v29 }
 0x34d   :  { %v429_v3 = vrot.slane %v428_v30, 2  ;;  %v735_v32 = vrot.slane %v734_v31, 2 }
 0x34f   :  { %v430_v33 = vmax.f32 %v428_v30, %v429_v3  ;;  %v736_v34 = vmax.f32 %v734_v31, %v735_v32 }
 0x351   :  { %v431_v36 = vrot.slane %v430_v33, 1  ;;  %v737_v17 = vrot.slane %v736_v34, 1 }
 0x353   :  { %v432_v60 = vmax.f32 %v430_v33, %v431_v36  ;;  %v738_v61 = vmax.f32 %v736_v34, %v737_v17 }
 0x355   :  { %v435_v59 = vsub.f32 %v324_v19, %v432_v60  ;;  %v436_v62 = vsub.f32 %v325_v22, %v432_v60  ;;  %v739_v11 = vsub.f32 %v322_v9, %v738_v61  ;;  %v740_v38 = vsub.f32 %v323_v14, %v738_v61 }
 0x356   :  { %v742_v40 = vsub.f32 %v325_v22, %v738_v61  ;;  %v741_v43 = vsub.f32 %v324_v19, %v738_v61  ;;  %v433_v35 = vsub.f32 %v322_v9, %v432_v60  ;;  %v434_v45 = vsub.f32 %v323_v14, %v432_v60 }
 0x357   :  { %v441_v46 = vmul.f32 1.442695, %v435_v59  ;;  %v743_v42 = vmul.f32 1.442695, %v739_v11  ;;  %v745_v47 = vmul.f32 1.442695, %v740_v38 }
 0x358   :  { %v749_v48 = vmul.f32 1.442695, %v742_v40  ;;  %v747_v49 = vmul.f32 1.442695, %v741_v43  ;;  %v437_v50 = vmul.f32 1.442695, %v433_v35 }
 0x359   :  { %1528 = vpow2.f32 %v441_v46  ;;  %v439_v51 = vmul.f32 1.442695, %v434_v45  ;;  %v443_v52 = vmul.f32 1.442695, %v436_v62 }
 0x35a   :  { %1530 = vpow2.f32 %v743_v42 }
 0x35b   :  { %1532 = vpow2.f32 %v745_v47 }
 0x35c   :  { %1534 = vpow2.f32 %v749_v48 }
 0x35d   :  { %1536 = vpow2.f32 %v747_v49 }
 0x35e   :  { %1538 = vpow2.f32 %v437_v50 }
 0x35f   :  { %1540 = vpow2.f32 %v439_v51 }
 0x360   :  { %1542 = vpow2.f32 %v443_v52 }
 0x363   :  { %v1529_v53 = vpop.eup %1528 }
 0x364   :  { %v1531_v54 = vpop.eup %1530  ;;  %v448_v5 = vsel %vm196_vm0, %v1529_v53, 0.0 }
 0x365   :  { %v1533_v41 = vpop.eup %1532  ;;  %v751_v44 = vsel %vm659_vm1, %v1531_v54, 0.0 }
 0x366   :  { %v1535_v37 = vpop.eup %1534  ;;  %v752_v55 = vsel %vm659_vm1, %v1533_v41, 0.0 }
 0x367   :  { %v1537_v56 = vpop.eup %1536  ;;  %v753_v57 = vadd.f32 %v752_v55, %v751_v44  ;;  %v756_v9 = vsel %vm659_vm1, %v1535_v37, 0.0 }
 0x368   :  { %v1539_v58 = vpop.eup %1538  ;;  %v754_v39 = vsel %vm659_vm1, %v1537_v56, 0.0 }
 0x369   :  { %v1541_v63 = vpop.eup %1540  ;;  %v755_v0 = vadd.f32 %v754_v39, %v753_v57  ;;  %v445_v6 = vsel %vm196_vm0, %v1539_v58, 0.0 }
 0x36a   :  { %v446_v10 = vsel %vm196_vm0, %v1541_v63, 0.0  ;;  %v1543_v7 = vpop.eup %1542 }
 0x36b   :  { %v757_v13 = vadd.f32 %v756_v9, %v755_v0  ;;  %v447_v14 = vadd.f32 %v446_v10, %v445_v6  ;;  %v450_v19 = vsel %vm196_vm0, %v1543_v7, 0.0 }
 0x36d   :  { %v758_v15 = vrot.slane %v757_v13, 4  ;;  %v449_v16 = vadd.f32 %v448_v5, %v447_v14 }
 0x36f   :  { %v759_v8 = vadd.f32 %v758_v15, %v757_v13  ;;  %v451_v2 = vadd.f32 %v450_v19, %v449_v16 }
 0x371   :  { %v760_v20 = vrot.slane %v759_v8, 2  ;;  %v452_v12 = vrot.slane %v451_v2, 4 }
 0x373   :  { %v761_v21 = vadd.f32 %v760_v20, %v759_v8  ;;  %v453_v22 = vadd.f32 %v452_v12, %v451_v2 }
 0x375   :  { %v762_v1 = vrot.slane %v761_v21, 1  ;;  %v454_v4 = vrot.slane %v453_v22, 2 }
 0x377   :  { %v763_v23 = vadd.f32 %v762_v1, %v761_v21  ;;  %v455_v24 = vadd.f32 %v454_v4, %v453_v22  ;;  %v1492_v21 = vld [vmem:[%s2047_s3] sm:$0xff]   ;;  %v1023_v1 = vld [vmem:[%s2048_s4 + $0x8] sm:$0xff]  ;;  %v1024_v4 = vld [vmem:[%s2048_s4 + $0x10] sm:$0xff] }
 0x378   :  { %v1022_v22 = vld [vmem:[%s2048_s4] sm:$0xff]  ;;  %1450 = vmatprep.mubr.msk.bf16.mxu0 %vm196_vm0, %v1492_v21 }
 0x379   :  { %1544 = vrcp.f32 %v763_v23  ;;  %v456_v25 = vrot.slane %v455_v24, 1  ;;  %v1025_v23 = vld [vmem:[%s2048_s4 + $0x18] sm:$0xff] }
 0x37b   :  { %v457_v18 = vadd.f32 %v456_v25, %v455_v24  ;;  %v1026_v24 = vld [vmem:[%s2048_s4 + $0x20] sm:$0xff]  ;;  %v1027_v25 = vld [vmem:[%s2048_s4 + $0x28] sm:$0xff] }
 0x37d   :  { %1546 = vrcp.f32 %v457_v18  ;;  %v1028_v18 = vld [vmem:[%s2048_s4 + $0x30] sm:$0xff] }
 0x383   :  { %v1545_v26 = vpop.eup %1544 }
 0x384   :  { %v768_v27 = vmul.f32 %v1545_v26, %v1537_v56  ;;  %v769_v28 = vmul.f32 %v1545_v26, %v1535_v37  ;;  %v766_v29 = vmul.f32 %v1545_v26, %v1531_v54  ;;  %v767_v30 = vmul.f32 %v1545_v26, %v1533_v41  ;;  %v1029_v26 = vld [vmem:[%s2048_s4 + $0x38] sm:$0xff] }
 0x386   :  { %v771_v31 = vpack.c.bf16 %v769_v28, %v768_v27  ;;  %v770_v3 = vpack.c.bf16 %v767_v30, %v766_v29 }
 0x387   :  { %v1547_v32 = vpop.eup %1546 }
 0x388   :  { %881 = vrot.lane.b32.xlu1 %v771_v31, %s1605_s1  ;;  %879 = vrot.lane.b32.xlu0 %v770_v3, %s1605_s1  ;;  %v460_v33 = vmul.f32 %v1547_v32, %v1539_v58  ;;  %v461_v34 = vmul.f32 %v1547_v32, %v1541_v63  ;;  %v462_v36 = vmul.f32 %v1547_v32, %v1529_v53 }
 0x389   :  { %v463_v17 = vmul.f32 %v1547_v32, %v1543_v7 }
 0x38a   :  { %v464_v60 = vpack.c.bf16 %v461_v34, %v460_v33 }
 0x38b   :  { %v465_v61 = vpack.c.bf16 %v463_v17, %v462_v36 }
 0x38c   :  { %1406 = vmatprep.subr.bf16.mxu1 %v464_v60 }
 0x38d   :  { %1407 = vmatpush3.bf16.msra.mxu1 %v464_v60 }
 0x38e   :  { %1408 = vmatprep.subr.bf16.mxu1 %v465_v61 }
 0x391   :  { %1409 = vmatpush3.bf16.msra.mxu1 %v465_v61 }
 0x3d9   :  { %v1400_v59 = vpop.f32.mrb[0].mxu1 }
 0x3da   :  { %v518_v62 = vpop.f32.mrb[1].mxu1 }
 0x3db   :  { %v1401_v11 = vpop.f32.mrb[2].mxu1 }
 0x3dc   :  { %v550_v38 = vpack.c.bf16 %v1401_v11, %v1400_v59  ;;  %v521_v40 = vpop.f32.mrb[3].mxu1 }
 0x3dd   :  { %v549_v43 = vpack.c.bf16 %v521_v40, %v518_v62 }
 0x3df   :  { %1410 = vmatprep.mubr.msk.bf16.mxu1 %vm553_vm2, %v549_v43 }
 0x3e0   :  { %1411 = vmatmul.mubr.msk.bf16.vlgmr.msra.gmra.mrb[8].mxu1 %vm553_vm2, %v550_v38 }
 0x3e1   :  { %v1404_v35 = vpop.f32.mrb[4].mxu1 }
 0x3e2   :  { %v534_v45 = vpop.f32.mrb[5].mxu1 }
 0x3e3   :  { %v1405_v46 = vpop.f32.mrb[6].mxu1 }
 0x3e4   :  { %v552_v42 = vpack.c.bf16 %v1405_v46, %v1404_v35  ;;  %v537_v47 = vpop.f32.mrb[7].mxu1  ;;  %v1494_v46 = vld [vmem:[%s2047_s3 + $0x10] sm:$0xff]  }
 0x3e5   :  { %v551_v48 = vpack.c.bf16 %v537_v47, %v534_v45  ;;  %v1493_v45 = vld [vmem:[%s2047_s3 + $0x8] sm:$0xff]   ;;  %v1606_v47 = vmov 0.0  }
 0x3e7   :  { %1414 = vmatprep.mubr.msk.bf16.mxu1 %vm553_vm2, %v551_v48 }
 0x3e8   :  { %1415 = vmatmul.mubr.msk.bf16.gmra.mrb[12].mxu1 %vm553_vm2, %v552_v42  ;;  %v1495_v42 = vld [vmem:[%s2047_s3 + $0x18] sm:$0xff]  }
 0x3fa   :  { %v880_v49 = vpop.permute.xlu0 %879  ;;  %v882_v50 = vpop.permute.xlu1 %881 }
 0x3fb   :  { %1430 = vmatprep.subr.bf16.mxu1 %v880_v49 }
 0x3fc   :  { %1431 = vmatpush3.bf16.msra.mxu1 %v880_v49 }
 0x3fd   :  { %1432 = vmatprep.subr.bf16.mxu1 %v882_v50 }
 0x400   :  { %1433 = vmatpush3.bf16.msra.mxu1 %v882_v50 }
 0x401   :  { %1458 = vmatprep.subr.bf16.mxu1 %v1606_v47 }
 0x402   :  { %v1424_v51 = vpop.f32.mrb[16].mxu0 }
 0x403   :  { %v842_v52 = vpop.f32.mrb[17].mxu0 }
 0x404   :  { %v1425_v53 = vpop.f32.mrb[18].mxu0 }
 0x405   :  { %v874_v54 = vpack.c.bf16 %v1425_v53, %v1424_v51  ;;  %v845_v41 = vpop.f32.mrb[19].mxu0 }
 0x406   :  { %v873_v44 = vpack.c.bf16 %v845_v41, %v842_v52 }
 0x408   :  { %1434 = vmatprep.mubr.msk.bf16.mxu1 %vm553_vm2, %v873_v44 }
 0x409   :  { %1435 = vmatmul.mubr.msk.bf16.vlgmr.msra.gmra.mrb[16].mxu1 %vm553_vm2, %v874_v54 }
 0x40a   :  { %v1428_v37 = vpop.f32.mrb[20].mxu0 }
 0x40b   :  { %v858_v55 = vpop.f32.mrb[21].mxu0 }
 0x40c   :  { %v1429_v56 = vpop.f32.mrb[22].mxu0 }
 0x40d   :  { %v876_v57 = vpack.c.bf16 %v1429_v56, %v1428_v37  ;;  %v861_v58 = vpop.f32.mrb[23].mxu0 }
 0x40e   :  { %v875_v39 = vpack.c.bf16 %v861_v58, %v858_v55 }
 0x410   :  { %1438 = vmatprep.mubr.msk.bf16.mxu1 %vm553_vm2, %v875_v39 }
 0x411   :  { %1439 = vmatmul.mubr.msk.bf16.gmra.mrb[20].mxu1 %vm553_vm2, %v876_v57 }
 0x412   :  { %1466 = vmatprep.mubr.msk.bf16.mxu1 %vm1607_vm3, %v1606_v47 }
 0x4b3   :  { %v1412_v63 = vpop.f32.mrb[8].mxu1 }
 0x4b4   :  { %633 = vst.msk [vmem:[#allocation3 + $0x10] sm:$0xff] %vm196_vm0, %v1412_v63  ;;  %v600_v0 = vpop.f32.mrb[9].mxu1 }
 0x4b5   :  { %631 = vst.msk [vmem:[#allocation3] sm:$0xff] %vm196_vm0, %v600_v0  ;;  %v1413_v6 = vpop.f32.mrb[10].mxu1  ;;  %v1548_v0 = vld [vmem:[%s2044_s0 + $0x10] sm:$0xff] }
 0x4b6   :  { %634 = vst.msk [vmem:[#allocation3 + $0x18] sm:$0xff] %vm196_vm0, %v1413_v6  ;;  %v603_v9 = vpop.f32.mrb[11].mxu1 }
 0x4b7   :  { %632 = vst.msk [vmem:[#allocation3 + $0x8] sm:$0xff] %vm196_vm0, %v603_v9 }
 0x4bb   :  { %v1416_v10 = vpop.f32.mrb[12].mxu1 }
 0x4bc   :  { %637 = vst.msk [vmem:[#allocation3 + $0x30] sm:$0xff] %vm196_vm0, %v1416_v10  ;;  %v616_v7 = vpop.f32.mrb[13].mxu1  ;;  %v1549_v10 = vld [vmem:[%s2044_s0] sm:$0xff] }
 0x4bd   :  { %635 = vst.msk [vmem:[#allocation3 + $0x20] sm:$0xff] %vm196_vm0, %v616_v7  ;;  %v1417_v13 = vpop.f32.mrb[14].mxu1 }
 0x4be   :  { %638 = vst.msk [vmem:[#allocation3 + $0x38] sm:$0xff] %vm196_vm0, %v1417_v13  ;;  %v619_v14 = vpop.f32.mrb[15].mxu1 }
 0x4bf   :  { %636 = vst.msk [vmem:[#allocation3 + $0x28] sm:$0xff] %vm196_vm0, %v619_v14 }
 0x4dc   :  { %v1436_v5 = vpop.f32.mrb[16].mxu1 }
 0x4dd   :  { %v931_v15 = vpop.f32.mrb[17].mxu1 }
 0x4de   :  { %970 = vrot.lane.b32.xlu0 %v931_v15, %s1605_s1  ;;  %v1437_v16 = vpop.f32.mrb[18].mxu1 }
 0x4df   :  { %v934_v19 = vpop.f32.mrb[19].mxu1 }
 0x4e0   :  { %972 = vrot.lane.b32.xlu1 %v934_v19, %s1605_s1 }
 0x4e2   :  { %974 = vrot.lane.b32.xlu0 %v1436_v5, %s1605_s1  ;;  %v1550_v5 = vld [vmem:[%s2044_s0 + $0x18] sm:$0xff] }
 0x4e4   :  { %976 = vrot.lane.b32.xlu1 %v1437_v16, %s1605_s1  ;;  %v1440_v8 = vpop.f32.mrb[20].mxu1 }
 0x4e5   :  { %v947_v2 = vpop.f32.mrb[21].mxu1 }
 0x4e6   :  { %978 = vrot.lane.b32.xlu0 %v947_v2, %s1605_s1  ;;  %v1441_v20 = vpop.f32.mrb[22].mxu1 }
 0x4e7   :  { %v950_v12 = vpop.f32.mrb[23].mxu1 }
 0x4e8   :  { %980 = vrot.lane.b32.xlu1 %v950_v12, %s1605_s1 }
 0x4ea   :  { %982 = vrot.lane.b32.xlu0 %v1440_v8, %s1605_s1  ;;  %v1551_v8 = vld [vmem:[%s2044_s0 + $0x8] sm:$0xff] }
 0x4ec   :  { %984 = vrot.lane.b32.xlu1 %v1441_v20, %s1605_s1 }
 0x4ee   :  { %1032 = vperm.xlu0 %1482, %v1022_v22  }
 0x4f0   :  { %1037 = vperm.xlu1 %1483, %v1023_v1  }
 0x4f2   :  { %1042 = vperm.xlu0 %1482, %v1024_v4  }
 0x4f4   :  { %1047 = vperm.xlu1 %1483, %v1025_v23  }
 0x4f6   :  { %1052 = vperm.xlu0 %1482, %v1026_v24  }
 0x4f8   :  { %1057 = vperm.xlu1 %1483, %v1027_v25  }
 0x4fa   :  { %1062 = vperm.xlu0 %1482, %v1028_v18  }
 0x4fc   :  { %1067 = vperm.xlu1 %1483, %v1029_v26  }
 0x550   :  { %v971_v27 = vpop.permute.xlu0 %970 }
 0x551   :  { %994 = vst.msk [vmem:[#allocation3] sm:$0xff] %vm659_vm1, %v971_v27 }
 0x552   :  { %v973_v28 = vpop.permute.xlu1 %972 }
 0x553   :  { %995 = vst.msk [vmem:[#allocation3 + $0x8] sm:$0xff] %vm659_vm1, %v973_v28 }
 0x554   :  { %v975_v29 = vpop.permute.xlu0 %974 }
 0x555   :  { %996 = vst.msk [vmem:[#allocation3 + $0x10] sm:$0xff] %vm659_vm1, %v975_v29 }
 0x556   :  { %v977_v30 = vpop.permute.xlu1 %976 }
 0x557   :  { %997 = vst.msk [vmem:[#allocation3 + $0x18] sm:$0xff] %vm659_vm1, %v977_v30 }
 0x558   :  { %v979_v31 = vpop.permute.xlu0 %978  ;;  %v1002_v32 = vld [vmem:[#allocation3] sm:$0xff] }
 0x559   :  { %998 = vst.msk [vmem:[#allocation3 + $0x20] sm:$0xff] %vm659_vm1, %v979_v31  ;;  %v1552_v31 = vld [vmem:[%s2044_s0 + $0x30] sm:$0xff] }
 0x55a   :  { %v981_v3 = vpop.permute.xlu1 %980  ;;  %v1003_v33 = vld [vmem:[#allocation3 + $0x8] sm:$0xff] }
 0x55b   :  { %999 = vst.msk [vmem:[#allocation3 + $0x28] sm:$0xff] %vm659_vm1, %v981_v3  ;;  %v1018_v34 = vpack.c.bf16 %v1003_v33, %v1002_v32  ;;  %v1553_v33 = vld [vmem:[%s2044_s0 + $0x20] sm:$0xff] }
 0x55c   :  { %v983_v36 = vpop.permute.xlu0 %982  ;;  %v1004_v60 = vld [vmem:[#allocation3 + $0x10] sm:$0xff] }
 0x55d   :  { %1000 = vst.msk [vmem:[#allocation3 + $0x30] sm:$0xff] %vm659_vm1, %v983_v36  ;;  %1442 = vmatprep.subr.bf16.mxu0 %v1018_v34 }
 0x55e   :  { %1443 = vmatpush3.bf16.msra.mxu0 %v1018_v34  ;;  %v985_v17 = vpop.permute.xlu1 %984  ;;  %v1005_v61 = vld [vmem:[#allocation3 + $0x18] sm:$0xff] }
 0x55f   :  { %1001 = vst.msk [vmem:[#allocation3 + $0x38] sm:$0xff] %vm659_vm1, %v985_v17  ;;  %v1019_v59 = vpack.c.bf16 %v1005_v61, %v1004_v60  ;;  %v1554_v60 = vld [vmem:[%s2044_s0 + $0x38] sm:$0xff] }
 0x560   :  { %v1006_v62 = vld [vmem:[#allocation3 + $0x20] sm:$0xff] }
 0x561   :  { %1444 = vmatprep.subr.bf16.mxu0 %v1019_v59 }
 0x562   :  { %1445 = vmatpush3.bf16.msra.mxu0 %v1019_v59  ;;  %v1007_v11 = vld [vmem:[#allocation3 + $0x28] sm:$0xff] }
 0x563   :  { %v1020_v38 = vpack.c.bf16 %v1007_v11, %v1006_v62  ;;  %v1555_v62 = vld [vmem:[%s2044_s0 + $0x28] sm:$0xff]  ;;  %s1608_s0 = smov [#allocation7]  }
 0x564   :  { %v1008_v40 = vld [vmem:[#allocation3 + $0x30] sm:$0xff]  ;;  %s1265_s17 = sshll.u32 %s1608_s0, 4  ;;  %s1266_s17 = int_to_ptr.vmem [resolvable:$true] %s1265_s17 }
 0x565   :  { %1446 = vmatprep.subr.bf16.mxu0 %v1020_v38  ;;  %s1556_s18 = scalar_lea.vmem %s1266_s17, 1024  ;;  %p1561_p1 = scmp.lt.s32.totalorder %s1266_s17, %s1266_s17 }
 0x566   :  { %1447 = vmatpush3.bf16.msra.mxu0 %v1020_v38  ;;  %v1009_v43 = vld [vmem:[#allocation3 + $0x38] sm:$0xff]  ;;  %p1557_p0 = scmp.ne.s32.totalorder %s1266_s17, %s1556_s18  ;;  %p1562_p2 = scmp.lt.s32.totalorder %s1556_s18, %s1556_s18 }
 0x567   :  { %v1021_v35 = vpack.c.bf16 %v1009_v43, %v1008_v40 }
 0x568   :  { %p1563_p3 = por %p1562_p2, %p1561_p1 }
 0x569   :  { %1448 = vmatprep.subr.bf16.mxu0 %v1021_v35 }
 0x56a   :  { %1449 = vmatpush3.bf16.msra.mxu0 %v1021_v35  ;;  %p1564_p4 = pnand %p1563_p3, %p1557_p0 }
 0x56d   :  { %1451 = vmatmul.mubr.msk.bf16.vlgmr.msra.gmra.mrb[24].mxu0 %vm196_vm0, %v1493_v45  ;;  %v1033_v48 = vpop.permute.xlu0 %1032  ;;  %v1183_v45 = vld [vmem:[%s2049_s5] sm:$0x1] }
 0x56e   :  { %1454 = vmatprep.mubr.msk.bf16.mxu0 %vm196_vm0, %v1494_v46 }
 0x56f   :  { %v1038_v49 = vpop.permute.xlu1 %1037 }
 0x571   :  { %v1043_v50 = vpop.permute.xlu0 %1042 }
 0x573   :  { %v1048_v51 = vpop.permute.xlu1 %1047 }
 0x575   :  { %1455 = vmatmul.mubr.msk.bf16.gmra.mrb[28].mxu0 %vm196_vm0, %v1495_v42  ;;  %v1053_v41 = vpop.permute.xlu0 %1052 }
 0x577   :  { %v1058_v58 = vpop.permute.xlu1 %1057 }
 0x579   :  { %v1063_v16 = vpop.permute.xlu0 %1062 }
 0x57b   :  { %v1068_v4 = vpop.permute.xlu1 %1067 }
 0x640   :  { %v1452_v52 = vpop.f32.mrb[24].mxu0 }
 0x641   :  { %v1145_v53 = vadd.f32 %v1452_v52, %v1043_v50  ;;  %v1136_v54 = vpop.f32.mrb[25].mxu0 }
 0x642   :  { %v1137_v44 = vadd.f32 %v1136_v54, %v1033_v48  ;;  %v1453_v37 = vpop.f32.mrb[26].mxu0 }
 0x643   :  { %v1169_v55 = vmax.f32 %v1145_v53, 0.0  ;;  %v1148_v56 = vadd.f32 %v1453_v37, %v1048_v51  ;;  %v1139_v57 = vpop.f32.mrb[27].mxu0 }
 0x644   :  { %v1167_v39 = vmax.f32 %v1137_v44, 0.0  ;;  %v1140_v63 = vadd.f32 %v1139_v57, %v1038_v49 }
 0x645   :  { %v1177_v6 = vadd.f32 %v1548_v0, %v1169_v55  ;;  %v1170_v9 = vmax.f32 %v1148_v56, 0.0 }
 0x646   :  { %v1175_v7 = vadd.f32 %v1549_v10, %v1167_v39  ;;  %v1168_v13 = vmax.f32 %v1140_v63, 0.0 }
 0x647   :  { %v1236_v14 = vmul.f32 %v1548_v0, %v1177_v6  ;;  %v1178_v15 = vadd.f32 %v1550_v5, %v1170_v9 }
 0x648   :  { %v1234_v19 = vmul.f32 %v1549_v10, %v1175_v7  ;;  %v1176_v2 = vadd.f32 %v1551_v8, %v1168_v13  ;;  %v1456_v20 = vpop.f32.mrb[28].mxu0 }
 0x649   :  { %1244 = vst [vmem:[#allocation7 + $0x10] sm:$0xff] %v1236_v14  ;;  %v1185_v12 = vpack.c.bf16 %v1178_v15, %v1177_v6  ;;  %v1237_v21 = vmul.f32 %v1550_v5, %v1178_v15  ;;  %v1161_v22 = vadd.f32 %v1456_v20, %v1063_v16  ;;  %v1152_v1 = vpop.f32.mrb[29].mxu0 }
 0x64a   :  { %1242 = vst [vmem:[#allocation7] sm:$0xff] %v1234_v19  ;;  %v1184_v23 = vpack.c.bf16 %v1176_v2, %v1175_v7  ;;  %v1235_v24 = vmul.f32 %v1551_v8, %v1176_v2  ;;  %v1153_v25 = vadd.f32 %v1152_v1, %v1053_v41  ;;  %v1457_v18 = vpop.f32.mrb[30].mxu0 }
 0x64b   :  { %1245 = vst [vmem:[#allocation7 + $0x18] sm:$0xff] %v1237_v21  ;;  %v1173_v26 = vmax.f32 %v1161_v22, 0.0  ;;  %v1164_v27 = vadd.f32 %v1457_v18, %v1068_v4  ;;  %v1155_v28 = vpop.f32.mrb[31].mxu0 }
 0x64c   :  { %1243 = vst [vmem:[#allocation7 + $0x8] sm:$0xff] %v1235_v24  ;;  %v1171_v29 = vmax.f32 %v1153_v25, 0.0  ;;  %v1156_v30 = vadd.f32 %v1155_v28, %v1058_v58  ;;  %1459 = vmatpush3.bf16.msra.mxu1 %v1184_v23 }
 0x64d   :  { %v1181_v3 = vadd.f32 %v1552_v31, %v1173_v26  ;;  %v1174_v32 = vmax.f32 %v1164_v27, 0.0  ;;  %1460 = vmatprep.subr.bf16.mxu1 %v1606_v47 }
 0x64e   :  { %v1179_v34 = vadd.f32 %v1553_v33, %v1171_v29  ;;  %v1172_v36 = vmax.f32 %v1156_v30, 0.0 }
 0x64f   :  { %v1240_v17 = vmul.f32 %v1552_v31, %v1181_v3  ;;  %v1182_v61 = vadd.f32 %v1554_v60, %v1174_v32 }
 0x650   :  { %v1238_v59 = vmul.f32 %v1553_v33, %v1179_v34  ;;  %v1180_v11 = vadd.f32 %v1555_v62, %v1172_v36  ;;  %1461 = vmatpush3.bf16.msra.mxu1 %v1185_v12 }
 0x651   :  { %1248 = vst [vmem:[#allocation7 + $0x30] sm:$0xff] %v1240_v17  ;;  %v1187_v38 = vpack.c.bf16 %v1182_v61, %v1181_v3  ;;  %v1241_v40 = vmul.f32 %v1554_v60, %v1182_v61  ;;  %1462 = vmatprep.subr.bf16.mxu1 %v1606_v47 }
 0x652   :  { %1246 = vst [vmem:[#allocation7 + $0x20] sm:$0xff] %v1238_v59  ;;  %v1186_v43 = vpack.c.bf16 %v1180_v11, %v1179_v34  ;;  %v1239_v35 = vmul.f32 %v1555_v62, %v1180_v11 }
 0x653   :  { %1249 = vst [vmem:[#allocation7 + $0x38] sm:$0xff] %v1241_v40 }
 0x654   :  { %1247 = vst [vmem:[#allocation7 + $0x28] sm:$0xff] %v1239_v35  ;;  %1463 = vmatpush3.bf16.msra.mxu1 %v1186_v43 }
 0x655   :  { %1464 = vmatprep.subr.bf16.mxu1 %v1606_v47 }
 0x658   :  { %1465 = vmatpush3.bf16.msra.mxu1 %v1187_v38 }
 0x65b   :  { %1467 = vmatmul.mubr.msk.bf16.vlgmr.msra.gmra.mrb[24].mxu1 %vm196_vm0, %v1183_v45 }
 0x65c   :  { %1567 = shalt.err (!%p1564_p4)
}
 0x65d   :  { %s1568_s20 = scalar_lea.hbm %s2052_s8, 1024 }
 0x65e   :  { %p1569_p5 = scmp.ne.s32.totalorder %s2052_s8, %s1568_s20  ;;  %p1572_p6 = scmp.lt.u32.totalorder %s1568_s20, %s2052_s8 }
 0x660   :  { %p1574_p7 = pnand %p1572_p6, %p1569_p5 }
 0x662   :  { %1577 = shalt.err (!%p1574_p7)
}
 0x663   :  { %s1609_s3 = smov 128   ;;  %s1610_s24 = smov 8   ;;  %v1189_v46 = vstv %s2050_s6 }
 0x664   :  { %1271 = dma.vmem_to_hbm [thread:$0]  %s1266_s17, 1024, %s2052_s8, [#allocation8], %s1609_s3, %s1609_s3, %s1610_s24  }
 0x665   :  { %s1611_s28 = smov [#allocation5]  }
 0x666   :  { %s1256_s29 = sshll.u32 %s1611_s28, 4  ;;  %s1257_s29 = int_to_ptr.vmem [resolvable:$true] %s1256_s29 }
 0x667   :  { %s1578_s30 = scalar_lea.vmem %s1257_s29, 16  ;;  %s1582_s9 = scalar_lea.vmem %s1257_s29, 32 }
 0x668   :  { %p1579_p8 = scmp.ne.s32.totalorder %s1257_s29, %s1578_s30  ;;  %p1583_p9 = scmp.lt.s32.totalorder %s1257_s29, %s1257_s29 }
 0x669   :  { %p1584_p10 = scmp.lt.s32.totalorder %s1582_s9, %s1578_s30 }
 0x66b   :  { %p1585_p11 = por %p1584_p10, %p1583_p9 }
 0x66d   :  { %p1586_p12 = pnand %p1585_p11, %p1579_p8 }
 0x72e   :  { %v1227_v42 = vpop.f32.mrb[24].mxu1 }
 0x72f   :  { %v1228_v47 = vadd.f32 %v1227_v42, %v1189_v46  ;;  %v1468_v48 = vpop.f32.mrb[25].mxu1 }
 0x730   :  { %v1230_v49 = vpop.f32.mrb[26].mxu1 }
 0x731   :  { %1233 = vst [vmem:[#allocation5] sm:$0x1] %v1228_v47  ;;  %v1469_v50 = vpop.f32.mrb[27].mxu1 }
 0x732   :  { %1589 = shalt.err (!%p1586_p12)
}
 0x733   :  { %s1590_s6 = scalar_lea.hbm %s2051_s7, 16 }
 0x734   :  { %p1591_p13 = scmp.ne.s32.totalorder %s2051_s7, %s1590_s6  ;;  %p1594_p0 = scmp.lt.u32.totalorder %s1590_s6, %s2051_s7 }
 0x736   :  { %p1596_p1 = pnand %p1594_p0, %p1591_p13 }
 0x738   :  { %1599 = shalt.err (!%p1596_p1)
}
 0x739   :  { %1259 = dma.vmem_to_hbm [thread:$0]  %s1257_s29, 16, %s2051_s7, [#allocation6]  }
 0x73a   :  { %1600 = dma.done.wait [#allocation6], 16  }
 0x73b   :  { %1601 = vsyncadd [#allocation6], 4294967280 }
 0x73c   :  { %1602 = dma.done.wait [#allocation8], 1024  }
 0x73d   :  { %1603 = vsyncadd [#allocation8], 4294966272 }
 0x73e   :  { %1278 = vsyncpa [#allocation6], 1 }
 0x73f   :  { %1279 = vsyncpa [#allocation8], 1 }

</bundles_post_ra>
